<compile_context>
chip_gen: v5e
topology: v5e:2x2
jax: 0.10.0
libtpu: 0.0.40
codegen_flags: <defaults>
</compile_context>

<pallas_src>
import math
import functools

import jax
import jax.numpy as jnp
from jax import lax
from jax.experimental import pallas as pl
from jax.experimental.pallas import tpu as pltpu


def _layer_norm(x, gamma, beta, eps=1e-5):
    mu = jnp.mean(x, axis=-1, keepdims=True)
    var = jnp.mean((x - mu) ** 2, axis=-1, keepdims=True)
    return (x - mu) * lax.rsqrt(var + eps) * gamma + beta


def encoder_kernel(n_heads,
                   x_ref,
                   g1_ref, be1_ref,
                   wq_ref, bq_ref, wk_ref, bk_ref, wv_ref, bv_ref,
                   woh_ref, bo_ref,
                   g2_ref, be2_ref,
                   w1_ref, b1_ref, w2_ref, b2_ref,
                   out_ref):
    f32 = jnp.float32
    bf16 = jnp.bfloat16

    x = x_ref[0]                      # [S, E] fp32
    S, E = x.shape
    hd = E // n_heads
    scale = 1.0 / math.sqrt(hd)

    # ---- pre-norm 1 (fp32) ----
    skip = _layer_norm(x, g1_ref[0], be1_ref[0])
    skip_bf = skip.astype(bf16)

    # ---- QKV projections: full-width bf16 MXU matmuls, f32 accumulate ----
    q = (jnp.dot(skip_bf, wq_ref[...], preferred_element_type=f32)
         + bq_ref[0]) * scale          # scale folded into q once
    k = jnp.dot(skip_bf, wk_ref[...], preferred_element_type=f32) + bk_ref[0]
    v = jnp.dot(skip_bf, wv_ref[...], preferred_element_type=f32) + bv_ref[0]

    # ---- head split: [S, E] -> [H, S, hd] (static slices, leading-dim stack) ----
    def split_heads(t):
        return jnp.stack(
            [t[:, h * hd:(h + 1) * hd] for h in range(n_heads)], axis=0)

    qh = split_heads(q).astype(bf16)   # [H, S, hd]
    kh = split_heads(k).astype(bf16)
    vh = split_heads(v).astype(bf16)

    # ---- head-batched attention (no mask, no RoPE) ----
    scores = jnp.einsum('hqd,hkd->hqk', qh, kh,
                        preferred_element_type=f32)           # [H, S, S] fp32
    m = jnp.max(scores, axis=-1, keepdims=True)
    p = jnp.exp(scores - m)
    p = p * pl.reciprocal(jnp.sum(p, axis=-1, keepdims=True), approx=True)

    ctx = jnp.einsum('hqk,hkd->hqd', p.astype(bf16), vh,
                     preferred_element_type=f32)               # [H, S, hd]

    # ---- output projection, head-batched then summed (no lane concat) ----
    per_head = jnp.einsum('hqd,hde->hqe', ctx.astype(bf16), woh_ref[...],
                          preferred_element_type=f32)          # [H, S, E]
    attn = jnp.sum(per_head, axis=0) + bo_ref[0]               # [S, E] fp32

    # ---- residual 1 (residual is the normed skip, per the reference code) ----
    x2 = attn + skip

    # ---- pre-norm 2 + MLP (bf16 MXU operands, fp32 elementwise) ----
    skip2 = _layer_norm(x2, g2_ref[0], be2_ref[0])
    hidden = jnp.dot(skip2.astype(bf16), w1_ref[...],
                     preferred_element_type=f32) + b1_ref[0]
    hidden = jnp.maximum(hidden, 0.0)
    mlp = jnp.dot(hidden.astype(bf16), w2_ref[...],
                  preferred_element_type=f32) + b2_ref[0]

    # ---- residual 2 ----
    out_ref[0] = (mlp + skip2).astype(out_ref.dtype)


def encoder_forward(x, params, n_heads):
    B, S, E = x.shape
    Hd = params["w1"].shape[1]
    hd = E // n_heads
    bf16 = jnp.bfloat16

    # bf16 weights (halves weight VMEM / DMA bytes; f32 accumulation in-kernel).
    wq = params["wq"].astype(bf16)
    wk = params["wk"].astype(bf16)
    wv = params["wv"].astype(bf16)
    woh = params["wo"].reshape(n_heads, hd, E).astype(bf16)   # head-major Wo
    w1 = params["w1"].astype(bf16)
    w2 = params["w2"].astype(bf16)

    def full(shape):
        nd = len(shape)
        return pl.BlockSpec(shape, lambda b, _nd=nd: (0,) * _nd)

    in_specs = [
        pl.BlockSpec((1, S, E), lambda b: (b, 0, 0)),   # x
        full((1, E)), full((1, E)),                     # ln1 gamma/beta
        full((E, E)), full((1, E)),                     # Wq, bq
        full((E, E)), full((1, E)),                     # Wk, bk
        full((E, E)), full((1, E)),                     # Wv, bv
        full((n_heads, hd, E)), full((1, E)),           # Wo (head-major), bo
        full((1, E)), full((1, E)),                     # ln2 gamma/beta
        full((E, Hd)), full((1, Hd)),                   # W1, b1
        full((Hd, E)), full((1, E)),                    # W2, b2
    ]

    # Explicit VMEM budget: resident weights/biases + double-buffered x/out
    # blocks + headroom.  Never below the default scoped limit.
    weight_bytes = sum(int(a.size) * a.dtype.itemsize
                       for a in (wq, wk, wv, woh, w1, w2))
    bias_bytes = sum(int(params[k].size) * 4 for k in
                     ("g1", "be1", "bq", "bk", "bv", "bo", "g2", "be2",
                      "b1", "b2"))
    block_bytes = 2 * S * E * 4
    vmem_limit = int(min(100 * 1024 * 1024,
                         max(32 * 1024 * 1024,
                             2 * (weight_bytes + bias_bytes + 2 * block_bytes)
                             + (8 << 20))))

    flops = 2 * B * S * E * (4 * E + 2 * Hd) + 4 * B * S * S * E
    cost = pl.CostEstimate(
        flops=int(flops),
        transcendentals=int(B * n_heads * S * S),
        bytes_accessed=int(weight_bytes + bias_bytes + 2 * B * S * E * 4))

    kernel = functools.partial(encoder_kernel, n_heads)
    return pl.pallas_call(
        kernel,
        out_shape=jax.ShapeDtypeStruct((B, S, E), x.dtype),
        grid_spec=pltpu.PrefetchScalarGridSpec(
            num_scalar_prefetch=0,
            grid=(B,),
            in_specs=in_specs,
            out_specs=pl.BlockSpec((1, S, E), lambda b: (b, 0, 0)),
        ),
        compiler_params=pltpu.CompilerParams(
            dimension_semantics=("parallel",),
            vmem_limit_bytes=vmem_limit),
        cost_estimate=cost,
    )(x,
      params["g1"], params["be1"],
      wq, params["bq"], wk, params["bk"], wv, params["bv"],
      woh, params["bo"],
      params["g2"], params["be2"],
      w1, params["b1"], w2, params["b2"])


def encoder_reference(x, params, n_heads):
    """Pure-JAX fp32 reference matching the PyTorch forward semantics."""
    E = x.shape[-1]
    hd = E // n_heads

    def ln(t, g, b):
        mu = jnp.mean(t, axis=-1, keepdims=True)
        var = jnp.mean((t - mu) ** 2, axis=-1, keepdims=True)
        return (t - mu) / jnp.sqrt(var + 1e-5) * g + b

    skip = ln(x, params["g1"][0], params["be1"][0])
    q = skip @ params["wq"] + params["bq"][0]
    k = skip @ params["wk"] + params["bk"][0]
    v = skip @ params["wv"] + params["bv"][0]
    B, S, _ = x.shape
    qh = q.reshape(B, S, n_heads, hd).transpose(0, 2, 1, 3)
    kh = k.reshape(B, S, n_heads, hd).transpose(0, 2, 1, 3)
    vh = v.reshape(B, S, n_heads, hd).transpose(0, 2, 1, 3)
    scores = jnp.einsum("bhqd,bhkd->bhqk", qh, kh) / math.sqrt(hd)
    p = jax.nn.softmax(scores, axis=-1)
    o = jnp.einsum("bhqk,bhkd->bhqd", p, vh).transpose(0, 2, 1, 3).reshape(B, S, E)
    attn = o @ params["wo"] + params["bo"][0]
    x2 = attn + skip
    skip2 = ln(x2, params["g2"][0], params["be2"][0])
    h = jnp.maximum(skip2 @ params["w1"] + params["b1"][0], 0.0)
    mlp = h @ params["w2"] + params["b2"][0]
    return mlp + skip2


def init_params(key, emb_dim, hidden_dim):
    ks = jax.random.split(key, 8)
    s = 0.1
    return {
        "g1": jnp.ones((1, emb_dim), jnp.float32),
        "be1": jnp.zeros((1, emb_dim), jnp.float32),
        "wq": s * jax.random.normal(ks[0], (emb_dim, emb_dim), jnp.float32),
        "bq": jnp.zeros((1, emb_dim), jnp.float32),
        "wk": s * jax.random.normal(ks[1], (emb_dim, emb_dim), jnp.float32),
        "bk": jnp.zeros((1, emb_dim), jnp.float32),
        "wv": s * jax.random.normal(ks[2], (emb_dim, emb_dim), jnp.float32),
        "bv": jnp.zeros((1, emb_dim), jnp.float32),
        "wo": s * jax.random.normal(ks[3], (emb_dim, emb_dim), jnp.float32),
        "bo": jnp.zeros((1, emb_dim), jnp.float32),
        "g2": jnp.ones((1, emb_dim), jnp.float32),
        "be2": jnp.zeros((1, emb_dim), jnp.float32),
        "w1": s * jax.random.normal(ks[4], (emb_dim, hidden_dim), jnp.float32),
        "b1": 0.01 * jnp.ones((1, hidden_dim), jnp.float32),
        "w2": s * jax.random.normal(ks[5], (hidden_dim, emb_dim), jnp.float32),
        "b2": 0.01 * jnp.ones((1, emb_dim), jnp.float32),
    }


if __name__ == "__main__":
    B, S, emb_dim, hidden_dim, n_heads = 2, 8, 32, 64, 4
    key = jax.random.PRNGKey(0)
    kx, kp = jax.random.split(key)
    x = jax.random.normal(kx, (B, S, emb_dim), jnp.float32)
    params = init_params(kp, emb_dim, hidden_dim)

    out = encoder_forward(x, params, n_heads)
    out = jax.block_until_ready(out)

    ref = encoder_reference(x, params, n_heads)
    assert out.shape == (B, S, emb_dim)
    # bf16 MXU operands (fp32 accumulate) => compare against fp32 reference
    # with a bf16-appropriate tolerance.
    assert jnp.allclose(out, ref, atol=5e-2, rtol=5e-2), "mismatch vs JAX reference"
    print("KERNEL_OK")
</pallas_src>

<mosaic_0001>
module attributes {stable_mosaic.version = 11 : i64} {
  func.func @encoder_kernel(%arg0: i32, %arg1: memref<1x8x32xf32, #tpu.memory_space<vmem>>, %arg2: memref<1x32xf32, #tpu.memory_space<vmem>>, %arg3: memref<1x32xf32, #tpu.memory_space<vmem>>, %arg4: memref<32x32xbf16, #tpu.memory_space<vmem>>, %arg5: memref<1x32xf32, #tpu.memory_space<vmem>>, %arg6: memref<32x32xbf16, #tpu.memory_space<vmem>>, %arg7: memref<1x32xf32, #tpu.memory_space<vmem>>, %arg8: memref<32x32xbf16, #tpu.memory_space<vmem>>, %arg9: memref<1x32xf32, #tpu.memory_space<vmem>>, %arg10: memref<4x8x32xbf16, #tpu.memory_space<vmem>>, %arg11: memref<1x32xf32, #tpu.memory_space<vmem>>, %arg12: memref<1x32xf32, #tpu.memory_space<vmem>>, %arg13: memref<1x32xf32, #tpu.memory_space<vmem>>, %arg14: memref<32x64xbf16, #tpu.memory_space<vmem>>, %arg15: memref<1x64xf32, #tpu.memory_space<vmem>>, %arg16: memref<64x32xbf16, #tpu.memory_space<vmem>>, %arg17: memref<1x32xf32, #tpu.memory_space<vmem>>, %arg18: memref<1x8x32xf32, #tpu.memory_space<vmem>>) attributes {dimension_semantics = [#tpu.dimension_semantics<parallel>], iteration_bounds = array<i64: 2>, scalar_prefetch = 0 : i64, scratch_operands = 0 : i64, tpu.core_type = #tpu.core_type<tc>, window_params = [{transform_indices = @transform_0, window_bounds = array<i64: 1, 8, 32>}, {pipeline_mode = #tpu.pipeline_mode<synchronous>, transform_indices = @transform_1, window_bounds = array<i64: 1, 32>}, {pipeline_mode = #tpu.pipeline_mode<synchronous>, transform_indices = @transform_2, window_bounds = array<i64: 1, 32>}, {pipeline_mode = #tpu.pipeline_mode<synchronous>, transform_indices = @transform_3, window_bounds = array<i64: 32, 32>}, {pipeline_mode = #tpu.pipeline_mode<synchronous>, transform_indices = @transform_4, window_bounds = array<i64: 1, 32>}, {pipeline_mode = #tpu.pipeline_mode<synchronous>, transform_indices = @transform_5, window_bounds = array<i64: 32, 32>}, {pipeline_mode = #tpu.pipeline_mode<synchronous>, transform_indices = @transform_6, window_bounds = array<i64: 1, 32>}, {pipeline_mode = #tpu.pipeline_mode<synchronous>, transform_indices = @transform_7, window_bounds = array<i64: 32, 32>}, {pipeline_mode = #tpu.pipeline_mode<synchronous>, transform_indices = @transform_8, window_bounds = array<i64: 1, 32>}, {pipeline_mode = #tpu.pipeline_mode<synchronous>, transform_indices = @transform_9, window_bounds = array<i64: 4, 8, 32>}, {pipeline_mode = #tpu.pipeline_mode<synchronous>, transform_indices = @transform_10, window_bounds = array<i64: 1, 32>}, {pipeline_mode = #tpu.pipeline_mode<synchronous>, transform_indices = @transform_11, window_bounds = array<i64: 1, 32>}, {pipeline_mode = #tpu.pipeline_mode<synchronous>, transform_indices = @transform_12, window_bounds = array<i64: 1, 32>}, {pipeline_mode = #tpu.pipeline_mode<synchronous>, transform_indices = @transform_13, window_bounds = array<i64: 32, 64>}, {pipeline_mode = #tpu.pipeline_mode<synchronous>, transform_indices = @transform_14, window_bounds = array<i64: 1, 64>}, {pipeline_mode = #tpu.pipeline_mode<synchronous>, transform_indices = @transform_15, window_bounds = array<i64: 64, 32>}, {pipeline_mode = #tpu.pipeline_mode<synchronous>, transform_indices = @transform_16, window_bounds = array<i64: 1, 32>}, {transform_indices = @transform_17, window_bounds = array<i64: 1, 8, 32>}]} {
    %c0 = arith.constant 0 : index
    %c0_0 = arith.constant 0 : index
    %c0_1 = arith.constant 0 : index
    %0 = vector.load %arg1[%c0, %c0_0, %c0_1] : memref<1x8x32xf32, #tpu.memory_space<vmem>>, vector<1x8x32xf32>
    %1 = vector.shape_cast %0 : vector<1x8x32xf32> to vector<8x32xf32>
    %c0_2 = arith.constant 0 : index
    %c0_3 = arith.constant 0 : index
    %2 = vector.load %arg2[%c0_2, %c0_3] : memref<1x32xf32, #tpu.memory_space<vmem>>, vector<1x32xf32>
    %3 = vector.shape_cast %2 : vector<1x32xf32> to vector<32xf32>
    %c0_4 = arith.constant 0 : index
    %c0_5 = arith.constant 0 : index
    %4 = vector.load %arg3[%c0_4, %c0_5] : memref<1x32xf32, #tpu.memory_space<vmem>>, vector<1x32xf32>
    %5 = vector.shape_cast %4 : vector<1x32xf32> to vector<32xf32>
    %cst = arith.constant dense<0.000000e+00> : vector<8xf32>
    %6 = vector.multi_reduction <add>, %1, %cst [1] : vector<8x32xf32> to vector<8xf32>
    %7 = vector.shape_cast %6 : vector<8xf32> to vector<8x1xf32>
    %cst_6 = arith.constant 3.200000e+01 : f32
    %8 = vector.broadcast %cst_6 : f32 to vector<8x1xf32>
    %9 = arith.divf %7, %8 : vector<8x1xf32>
    %10 = vector.broadcast %9 : vector<8x1xf32> to vector<8x32xf32>
    %11 = arith.subf %1, %10 : vector<8x32xf32>
    %12 = arith.mulf %11, %11 : vector<8x32xf32>
    %cst_7 = arith.constant dense<0.000000e+00> : vector<8xf32>
    %13 = vector.multi_reduction <add>, %12, %cst_7 [1] : vector<8x32xf32> to vector<8xf32>
    %14 = vector.shape_cast %13 : vector<8xf32> to vector<8x1xf32>
    %cst_8 = arith.constant 3.200000e+01 : f32
    %15 = vector.broadcast %cst_8 : f32 to vector<8x1xf32>
    %16 = arith.divf %14, %15 : vector<8x1xf32>
    %17 = vector.broadcast %9 : vector<8x1xf32> to vector<8x32xf32>
    %18 = arith.subf %1, %17 : vector<8x32xf32>
    %cst_9 = arith.constant 9.99999974E-6 : f32
    %19 = vector.broadcast %cst_9 : f32 to vector<8x1xf32>
    %20 = arith.addf %16, %19 : vector<8x1xf32>
    %21 = math.rsqrt %20 : vector<8x1xf32>
    %22 = vector.broadcast %21 : vector<8x1xf32> to vector<8x32xf32>
    %23 = arith.mulf %18, %22 : vector<8x32xf32>
    %24 = vector.shape_cast %3 : vector<32xf32> to vector<1x32xf32>
    %25 = vector.broadcast %24 : vector<1x32xf32> to vector<8x32xf32>
    %26 = arith.mulf %23, %25 : vector<8x32xf32>
    %27 = vector.shape_cast %5 : vector<32xf32> to vector<1x32xf32>
    %28 = vector.broadcast %27 : vector<1x32xf32> to vector<8x32xf32>
    %29 = arith.addf %26, %28 : vector<8x32xf32>
    %30 = arith.truncf %29 : vector<8x32xf32> to vector<8x32xbf16>
    %c0_10 = arith.constant 0 : index
    %c0_11 = arith.constant 0 : index
    %31 = vector.load %arg4[%c0_10, %c0_11] : memref<32x32xbf16, #tpu.memory_space<vmem>>, vector<32x32xbf16>
    %cst_12 = arith.constant dense<0.000000e+00> : vector<8x32xf32>
    %32 = tpu.matmul %30, %31, %cst_12 {dimension_numbers = #tpu.dot_dimension_numbers<[1], [0], [0], [1], [0, 0, 1, 1], [], []>} : vector<8x32xbf16>, vector<32x32xbf16>, vector<8x32xf32> -> vector<8x32xf32>
    %c0_13 = arith.constant 0 : index
    %c0_14 = arith.constant 0 : index
    %33 = vector.load %arg5[%c0_13, %c0_14] : memref<1x32xf32, #tpu.memory_space<vmem>>, vector<1x32xf32>
    %34 = vector.shape_cast %33 : vector<1x32xf32> to vector<32xf32>
    %35 = vector.shape_cast %34 : vector<32xf32> to vector<1x32xf32>
    %36 = vector.broadcast %35 : vector<1x32xf32> to vector<8x32xf32>
    %37 = arith.addf %32, %36 : vector<8x32xf32>
    %cst_15 = arith.constant 0.353553385 : f32
    %38 = vector.broadcast %cst_15 : f32 to vector<8x32xf32>
    %39 = arith.mulf %37, %38 : vector<8x32xf32>
    %c0_16 = arith.constant 0 : index
    %c0_17 = arith.constant 0 : index
    %40 = vector.load %arg6[%c0_16, %c0_17] : memref<32x32xbf16, #tpu.memory_space<vmem>>, vector<32x32xbf16>
    %cst_18 = arith.constant dense<0.000000e+00> : vector<8x32xf32>
    %41 = tpu.matmul %30, %40, %cst_18 {dimension_numbers = #tpu.dot_dimension_numbers<[1], [0], [0], [1], [0, 0, 1, 1], [], []>} : vector<8x32xbf16>, vector<32x32xbf16>, vector<8x32xf32> -> vector<8x32xf32>
    %c0_19 = arith.constant 0 : index
    %c0_20 = arith.constant 0 : index
    %42 = vector.load %arg7[%c0_19, %c0_20] : memref<1x32xf32, #tpu.memory_space<vmem>>, vector<1x32xf32>
    %43 = vector.shape_cast %42 : vector<1x32xf32> to vector<32xf32>
    %44 = vector.shape_cast %43 : vector<32xf32> to vector<1x32xf32>
    %45 = vector.broadcast %44 : vector<1x32xf32> to vector<8x32xf32>
    %46 = arith.addf %41, %45 : vector<8x32xf32>
    %c0_21 = arith.constant 0 : index
    %c0_22 = arith.constant 0 : index
    %47 = vector.load %arg8[%c0_21, %c0_22] : memref<32x32xbf16, #tpu.memory_space<vmem>>, vector<32x32xbf16>
    %cst_23 = arith.constant dense<0.000000e+00> : vector<8x32xf32>
    %48 = tpu.matmul %30, %47, %cst_23 {dimension_numbers = #tpu.dot_dimension_numbers<[1], [0], [0], [1], [0, 0, 1, 1], [], []>} : vector<8x32xbf16>, vector<32x32xbf16>, vector<8x32xf32> -> vector<8x32xf32>
    %c0_24 = arith.constant 0 : index
    %c0_25 = arith.constant 0 : index
    %49 = vector.load %arg9[%c0_24, %c0_25] : memref<1x32xf32, #tpu.memory_space<vmem>>, vector<1x32xf32>
    %50 = vector.shape_cast %49 : vector<1x32xf32> to vector<32xf32>
    %51 = vector.shape_cast %50 : vector<32xf32> to vector<1x32xf32>
    %52 = vector.broadcast %51 : vector<1x32xf32> to vector<8x32xf32>
    %53 = arith.addf %48, %52 : vector<8x32xf32>
    %54 = vector.extract_strided_slice %39 {offsets = [0, 0], sizes = [8, 8], strides = [1, 1]} : vector<8x32xf32> to vector<8x8xf32>
    %55 = vector.extract_strided_slice %39 {offsets = [0, 8], sizes = [8, 8], strides = [1, 1]} : vector<8x32xf32> to vector<8x8xf32>
    %56 = vector.extract_strided_slice %39 {offsets = [0, 16], sizes = [8, 8], strides = [1, 1]} : vector<8x32xf32> to vector<8x8xf32>
    %57 = vector.extract_strided_slice %39 {offsets = [0, 24], sizes = [8, 8], strides = [1, 1]} : vector<8x32xf32> to vector<8x8xf32>
    %58 = vector.shape_cast %54 : vector<8x8xf32> to vector<1x8x8xf32>
    %59 = vector.shape_cast %55 : vector<8x8xf32> to vector<1x8x8xf32>
    %60 = vector.shape_cast %56 : vector<8x8xf32> to vector<1x8x8xf32>
    %61 = vector.shape_cast %57 : vector<8x8xf32> to vector<1x8x8xf32>
    %62 = tpu.concatenate %58, %59, %60, %61 in 0 : vector<1x8x8xf32>, vector<1x8x8xf32>, vector<1x8x8xf32>, vector<1x8x8xf32> -> vector<4x8x8xf32>
    %63 = arith.truncf %62 : vector<4x8x8xf32> to vector<4x8x8xbf16>
    %64 = vector.extract_strided_slice %46 {offsets = [0, 0], sizes = [8, 8], strides = [1, 1]} : vector<8x32xf32> to vector<8x8xf32>
    %65 = vector.extract_strided_slice %46 {offsets = [0, 8], sizes = [8, 8], strides = [1, 1]} : vector<8x32xf32> to vector<8x8xf32>
    %66 = vector.extract_strided_slice %46 {offsets = [0, 16], sizes = [8, 8], strides = [1, 1]} : vector<8x32xf32> to vector<8x8xf32>
    %67 = vector.extract_strided_slice %46 {offsets = [0, 24], sizes = [8, 8], strides = [1, 1]} : vector<8x32xf32> to vector<8x8xf32>
    %68 = vector.shape_cast %64 : vector<8x8xf32> to vector<1x8x8xf32>
    %69 = vector.shape_cast %65 : vector<8x8xf32> to vector<1x8x8xf32>
    %70 = vector.shape_cast %66 : vector<8x8xf32> to vector<1x8x8xf32>
    %71 = vector.shape_cast %67 : vector<8x8xf32> to vector<1x8x8xf32>
    %72 = tpu.concatenate %68, %69, %70, %71 in 0 : vector<1x8x8xf32>, vector<1x8x8xf32>, vector<1x8x8xf32>, vector<1x8x8xf32> -> vector<4x8x8xf32>
    %73 = arith.truncf %72 : vector<4x8x8xf32> to vector<4x8x8xbf16>
    %74 = vector.extract_strided_slice %53 {offsets = [0, 0], sizes = [8, 8], strides = [1, 1]} : vector<8x32xf32> to vector<8x8xf32>
    %75 = vector.extract_strided_slice %53 {offsets = [0, 8], sizes = [8, 8], strides = [1, 1]} : vector<8x32xf32> to vector<8x8xf32>
    %76 = vector.extract_strided_slice %53 {offsets = [0, 16], sizes = [8, 8], strides = [1, 1]} : vector<8x32xf32> to vector<8x8xf32>
    %77 = vector.extract_strided_slice %53 {offsets = [0, 24], sizes = [8, 8], strides = [1, 1]} : vector<8x32xf32> to vector<8x8xf32>
    %78 = vector.shape_cast %74 : vector<8x8xf32> to vector<1x8x8xf32>
    %79 = vector.shape_cast %75 : vector<8x8xf32> to vector<1x8x8xf32>
    %80 = vector.shape_cast %76 : vector<8x8xf32> to vector<1x8x8xf32>
    %81 = vector.shape_cast %77 : vector<8x8xf32> to vector<1x8x8xf32>
    %82 = tpu.concatenate %78, %79, %80, %81 in 0 : vector<1x8x8xf32>, vector<1x8x8xf32>, vector<1x8x8xf32>, vector<1x8x8xf32> -> vector<4x8x8xf32>
    %83 = arith.truncf %82 : vector<4x8x8xf32> to vector<4x8x8xbf16>
    "tpu.trace_start"() <{level = 10 : i32, message = "hqd,hkd->hqk"}> : () -> ()
    %cst_26 = arith.constant dense<0.000000e+00> : vector<4x8x8xf32>
    %84 = tpu.matmul %63, %73, %cst_26 {dimension_numbers = #tpu.dot_dimension_numbers<[2], [2], [1], [1], [0, 0, 0, 1, 1, 1], [0], [0]>} : vector<4x8x8xbf16>, vector<4x8x8xbf16>, vector<4x8x8xf32> -> vector<4x8x8xf32>
    "tpu.trace_stop"() : () -> ()
    %cst_27 = arith.constant dense<0xFF800000> : vector<4x8xf32>
    %85 = vector.multi_reduction <maximumf>, %84, %cst_27 [2] : vector<4x8x8xf32> to vector<4x8xf32>
    %86 = vector.shape_cast %85 : vector<4x8xf32> to vector<4x8x1xf32>
    %87 = vector.broadcast %86 : vector<4x8x1xf32> to vector<4x8x8xf32>
    %88 = arith.subf %84, %87 : vector<4x8x8xf32>
    %89 = math.exp %88 : vector<4x8x8xf32>
    %cst_28 = arith.constant dense<0.000000e+00> : vector<4x8xf32>
    %90 = vector.multi_reduction <add>, %89, %cst_28 [2] : vector<4x8x8xf32> to vector<4x8xf32>
    %91 = vector.shape_cast %90 : vector<4x8xf32> to vector<4x8x1xf32>
    %92 = tpu.reciprocal %91 {approx = true} : vector<4x8x1xf32> -> vector<4x8x1xf32>
    %93 = vector.broadcast %92 : vector<4x8x1xf32> to vector<4x8x8xf32>
    %94 = arith.mulf %89, %93 : vector<4x8x8xf32>
    %95 = arith.truncf %94 : vector<4x8x8xf32> to vector<4x8x8xbf16>
    "tpu.trace_start"() <{level = 10 : i32, message = "hqk,hkd->hqd"}> : () -> ()
    %cst_29 = arith.constant dense<0.000000e+00> : vector<4x8x8xf32>
    %96 = tpu.matmul %95, %83, %cst_29 {dimension_numbers = #tpu.dot_dimension_numbers<[2], [1], [1], [2], [0, 0, 0, 1, 1, 2], [0], [0]>} : vector<4x8x8xbf16>, vector<4x8x8xbf16>, vector<4x8x8xf32> -> vector<4x8x8xf32>
    "tpu.trace_stop"() : () -> ()
    %97 = arith.truncf %96 : vector<4x8x8xf32> to vector<4x8x8xbf16>
    %c0_30 = arith.constant 0 : index
    %c0_31 = arith.constant 0 : index
    %c0_32 = arith.constant 0 : index
    %98 = vector.load %arg10[%c0_30, %c0_31, %c0_32] : memref<4x8x32xbf16, #tpu.memory_space<vmem>>, vector<4x8x32xbf16>
    "tpu.trace_start"() <{level = 10 : i32, message = "hqd,hde->hqe"}> : () -> ()
    %cst_33 = arith.constant dense<0.000000e+00> : vector<4x8x32xf32>
    %99 = tpu.matmul %97, %98, %cst_33 {dimension_numbers = #tpu.dot_dimension_numbers<[2], [1], [1], [2], [0, 0, 0, 1, 1, 2], [0], [0]>} : vector<4x8x8xbf16>, vector<4x8x32xbf16>, vector<4x8x32xf32> -> vector<4x8x32xf32>
    "tpu.trace_stop"() : () -> ()
    %cst_34 = arith.constant dense<0.000000e+00> : vector<8x32xf32>
    %100 = vector.multi_reduction <add>, %99, %cst_34 [0] : vector<4x8x32xf32> to vector<8x32xf32>
    %c0_35 = arith.constant 0 : index
    %c0_36 = arith.constant 0 : index
    %101 = vector.load %arg11[%c0_35, %c0_36] : memref<1x32xf32, #tpu.memory_space<vmem>>, vector<1x32xf32>
    %102 = vector.shape_cast %101 : vector<1x32xf32> to vector<32xf32>
    %103 = vector.shape_cast %102 : vector<32xf32> to vector<1x32xf32>
    %104 = vector.broadcast %103 : vector<1x32xf32> to vector<8x32xf32>
    %105 = arith.addf %100, %104 : vector<8x32xf32>
    %106 = arith.addf %105, %29 : vector<8x32xf32>
    %c0_37 = arith.constant 0 : index
    %c0_38 = arith.constant 0 : index
    %107 = vector.load %arg12[%c0_37, %c0_38] : memref<1x32xf32, #tpu.memory_space<vmem>>, vector<1x32xf32>
    %108 = vector.shape_cast %107 : vector<1x32xf32> to vector<32xf32>
    %c0_39 = arith.constant 0 : index
    %c0_40 = arith.constant 0 : index
    %109 = vector.load %arg13[%c0_39, %c0_40] : memref<1x32xf32, #tpu.memory_space<vmem>>, vector<1x32xf32>
    %110 = vector.shape_cast %109 : vector<1x32xf32> to vector<32xf32>
    %cst_41 = arith.constant dense<0.000000e+00> : vector<8xf32>
    %111 = vector.multi_reduction <add>, %106, %cst_41 [1] : vector<8x32xf32> to vector<8xf32>
    %112 = vector.shape_cast %111 : vector<8xf32> to vector<8x1xf32>
    %cst_42 = arith.constant 3.200000e+01 : f32
    %113 = vector.broadcast %cst_42 : f32 to vector<8x1xf32>
    %114 = arith.divf %112, %113 : vector<8x1xf32>
    %115 = vector.broadcast %114 : vector<8x1xf32> to vector<8x32xf32>
    %116 = arith.subf %106, %115 : vector<8x32xf32>
    %117 = arith.mulf %116, %116 : vector<8x32xf32>
    %cst_43 = arith.constant dense<0.000000e+00> : vector<8xf32>
    %118 = vector.multi_reduction <add>, %117, %cst_43 [1] : vector<8x32xf32> to vector<8xf32>
    %119 = vector.shape_cast %118 : vector<8xf32> to vector<8x1xf32>
    %cst_44 = arith.constant 3.200000e+01 : f32
    %120 = vector.broadcast %cst_44 : f32 to vector<8x1xf32>
    %121 = arith.divf %119, %120 : vector<8x1xf32>
    %122 = vector.broadcast %114 : vector<8x1xf32> to vector<8x32xf32>
    %123 = arith.subf %106, %122 : vector<8x32xf32>
    %cst_45 = arith.constant 9.99999974E-6 : f32
    %124 = vector.broadcast %cst_45 : f32 to vector<8x1xf32>
    %125 = arith.addf %121, %124 : vector<8x1xf32>
    %126 = math.rsqrt %125 : vector<8x1xf32>
    %127 = vector.broadcast %126 : vector<8x1xf32> to vector<8x32xf32>
    %128 = arith.mulf %123, %127 : vector<8x32xf32>
    %129 = vector.shape_cast %108 : vector<32xf32> to vector<1x32xf32>
    %130 = vector.broadcast %129 : vector<1x32xf32> to vector<8x32xf32>
    %131 = arith.mulf %128, %130 : vector<8x32xf32>
    %132 = vector.shape_cast %110 : vector<32xf32> to vector<1x32xf32>
    %133 = vector.broadcast %132 : vector<1x32xf32> to vector<8x32xf32>
    %134 = arith.addf %131, %133 : vector<8x32xf32>
    %135 = arith.truncf %134 : vector<8x32xf32> to vector<8x32xbf16>
    %c0_46 = arith.constant 0 : index
    %c0_47 = arith.constant 0 : index
    %136 = vector.load %arg14[%c0_46, %c0_47] : memref<32x64xbf16, #tpu.memory_space<vmem>>, vector<32x64xbf16>
    %cst_48 = arith.constant dense<0.000000e+00> : vector<8x64xf32>
    %137 = tpu.matmul %135, %136, %cst_48 {dimension_numbers = #tpu.dot_dimension_numbers<[1], [0], [0], [1], [0, 0, 1, 1], [], []>} : vector<8x32xbf16>, vector<32x64xbf16>, vector<8x64xf32> -> vector<8x64xf32>
    %c0_49 = arith.constant 0 : index
    %c0_50 = arith.constant 0 : index
    %138 = vector.load %arg15[%c0_49, %c0_50] : memref<1x64xf32, #tpu.memory_space<vmem>>, vector<1x64xf32>
    %139 = vector.shape_cast %138 : vector<1x64xf32> to vector<64xf32>
    %140 = vector.shape_cast %139 : vector<64xf32> to vector<1x64xf32>
    %141 = vector.broadcast %140 : vector<1x64xf32> to vector<8x64xf32>
    %142 = arith.addf %137, %141 : vector<8x64xf32>
    %cst_51 = arith.constant 0.000000e+00 : f32
    %143 = vector.broadcast %cst_51 : f32 to vector<8x64xf32>
    %144 = arith.maximumf %142, %143 : vector<8x64xf32>
    %145 = arith.truncf %144 : vector<8x64xf32> to vector<8x64xbf16>
    %c0_52 = arith.constant 0 : index
    %c0_53 = arith.constant 0 : index
    %146 = vector.load %arg16[%c0_52, %c0_53] : memref<64x32xbf16, #tpu.memory_space<vmem>>, vector<64x32xbf16>
    %cst_54 = arith.constant dense<0.000000e+00> : vector<8x32xf32>
    %147 = tpu.matmul %145, %146, %cst_54 {dimension_numbers = #tpu.dot_dimension_numbers<[1], [0], [0], [1], [0, 0, 1, 1], [], []>} : vector<8x64xbf16>, vector<64x32xbf16>, vector<8x32xf32> -> vector<8x32xf32>
    %c0_55 = arith.constant 0 : index
    %c0_56 = arith.constant 0 : index
    %148 = vector.load %arg17[%c0_55, %c0_56] : memref<1x32xf32, #tpu.memory_space<vmem>>, vector<1x32xf32>
    %149 = vector.shape_cast %148 : vector<1x32xf32> to vector<32xf32>
    %150 = vector.shape_cast %149 : vector<32xf32> to vector<1x32xf32>
    %151 = vector.broadcast %150 : vector<1x32xf32> to vector<8x32xf32>
    %152 = arith.addf %147, %151 : vector<8x32xf32>
    %153 = arith.addf %152, %134 : vector<8x32xf32>
    %c0_57 = arith.constant 0 : index
    %c0_58 = arith.constant 0 : index
    %c0_59 = arith.constant 0 : index
    %154 = vector.load %arg18[%c0_57, %c0_58, %c0_59] : memref<1x8x32xf32, #tpu.memory_space<vmem>>, vector<1x8x32xf32>
    %155 = vector.shape_cast %154 : vector<1x8x32xf32> to vector<8x32xf32>
    %156 = vector.shape_cast %153 : vector<8x32xf32> to vector<1x8x32xf32>
    tpu.vector_store %arg18[%c0_57, %c0_58, %c0_59], %156 {strides = array<i32>} : memref<1x8x32xf32, #tpu.memory_space<vmem>>, vector<1x8x32xf32>,
    return
  }
  func.func @transform_0(%arg0: i32) -> (i32, i32, i32) {
    %c0_i32 = arith.constant 0 : i32
    %c0_i32_0 = arith.constant 0 : i32
    %c0_i32_1 = arith.constant 0 : i32
    return %arg0, %c0_i32, %c0_i32_0 : i32, i32, i32
  }
  func.func @transform_1(%arg0: i32) -> (i32, i32) {
    %c0_i32 = arith.constant 0 : i32
    %c0_i32_0 = arith.constant 0 : i32
    %c0_i32_1 = arith.constant 0 : i32
    return %c0_i32, %c0_i32_0 : i32, i32
  }
  func.func @transform_2(%arg0: i32) -> (i32, i32) {
    %c0_i32 = arith.constant 0 : i32
    %c0_i32_0 = arith.constant 0 : i32
    %c0_i32_1 = arith.constant 0 : i32
    return %c0_i32, %c0_i32_0 : i32, i32
  }
  func.func @transform_3(%arg0: i32) -> (i32, i32) {
    %c0_i32 = arith.constant 0 : i32
    %c0_i32_0 = arith.constant 0 : i32
    %c0_i32_1 = arith.constant 0 : i32
    return %c0_i32, %c0_i32_0 : i32, i32
  }
  func.func @transform_4(%arg0: i32) -> (i32, i32) {
    %c0_i32 = arith.constant 0 : i32
    %c0_i32_0 = arith.constant 0 : i32
    %c0_i32_1 = arith.constant 0 : i32
    return %c0_i32, %c0_i32_0 : i32, i32
  }
  func.func @transform_5(%arg0: i32) -> (i32, i32) {
    %c0_i32 = arith.constant 0 : i32
    %c0_i32_0 = arith.constant 0 : i32
    %c0_i32_1 = arith.constant 0 : i32
    return %c0_i32, %c0_i32_0 : i32, i32
  }
  func.func @transform_6(%arg0: i32) -> (i32, i32) {
    %c0_i32 = arith.constant 0 : i32
    %c0_i32_0 = arith.constant 0 : i32
    %c0_i32_1 = arith.constant 0 : i32
    return %c0_i32, %c0_i32_0 : i32, i32
  }
  func.func @transform_7(%arg0: i32) -> (i32, i32) {
    %c0_i32 = arith.constant 0 : i32
    %c0_i32_0 = arith.constant 0 : i32
    %c0_i32_1 = arith.constant 0 : i32
    return %c0_i32, %c0_i32_0 : i32, i32
  }
  func.func @transform_8(%arg0: i32) -> (i32, i32) {
    %c0_i32 = arith.constant 0 : i32
    %c0_i32_0 = arith.constant 0 : i32
    %c0_i32_1 = arith.constant 0 : i32
    return %c0_i32, %c0_i32_0 : i32, i32
  }
  func.func @transform_9(%arg0: i32) -> (i32, i32, i32) {
    %c0_i32 = arith.constant 0 : i32
    %c0_i32_0 = arith.constant 0 : i32
    %c0_i32_1 = arith.constant 0 : i32
    %c0_i32_2 = arith.constant 0 : i32
    return %c0_i32, %c0_i32_0, %c0_i32_1 : i32, i32, i32
  }
  func.func @transform_10(%arg0: i32) -> (i32, i32) {
    %c0_i32 = arith.constant 0 : i32
    %c0_i32_0 = arith.constant 0 : i32
    %c0_i32_1 = arith.constant 0 : i32
    return %c0_i32, %c0_i32_0 : i32, i32
  }
  func.func @transform_11(%arg0: i32) -> (i32, i32) {
    %c0_i32 = arith.constant 0 : i32
    %c0_i32_0 = arith.constant 0 : i32
    %c0_i32_1 = arith.constant 0 : i32
    return %c0_i32, %c0_i32_0 : i32, i32
  }
  func.func @transform_12(%arg0: i32) -> (i32, i32) {
    %c0_i32 = arith.constant 0 : i32
    %c0_i32_0 = arith.constant 0 : i32
    %c0_i32_1 = arith.constant 0 : i32
    return %c0_i32, %c0_i32_0 : i32, i32
  }
  func.func @transform_13(%arg0: i32) -> (i32, i32) {
    %c0_i32 = arith.constant 0 : i32
    %c0_i32_0 = arith.constant 0 : i32
    %c0_i32_1 = arith.constant 0 : i32
    return %c0_i32, %c0_i32_0 : i32, i32
  }
  func.func @transform_14(%arg0: i32) -> (i32, i32) {
    %c0_i32 = arith.constant 0 : i32
    %c0_i32_0 = arith.constant 0 : i32
    %c0_i32_1 = arith.constant 0 : i32
    return %c0_i32, %c0_i32_0 : i32, i32
  }
  func.func @transform_15(%arg0: i32) -> (i32, i32) {
    %c0_i32 = arith.constant 0 : i32
    %c0_i32_0 = arith.constant 0 : i32
    %c0_i32_1 = arith.constant 0 : i32
    return %c0_i32, %c0_i32_0 : i32, i32
  }
  func.func @transform_16(%arg0: i32) -> (i32, i32) {
    %c0_i32 = arith.constant 0 : i32
    %c0_i32_0 = arith.constant 0 : i32
    %c0_i32_1 = arith.constant 0 : i32
    return %c0_i32, %c0_i32_0 : i32, i32
  }
  func.func @transform_17(%arg0: i32) -> (i32, i32, i32) {
    %c0_i32 = arith.constant 0 : i32
    %c0_i32_0 = arith.constant 0 : i32
    %c0_i32_1 = arith.constant 0 : i32
    return %arg0, %c0_i32, %c0_i32_0 : i32, i32, i32
  }
}

</mosaic_0001>

<bundles_post_ra>
// kernel: tpu_custom_call.1
= control target key start
LH: loop header
LB: loop body
LE: loop exit
PB: predicated region body
PF: predicated region fallthrough
CT: control target
= control target key end

     0   :  { %s2102_s0 = inlined_call_operand.vmem [shape: f32[2,8,32], index: 0, kind: input, shape index: {}]   ;;  %s2103_s1 = inlined_call_operand.hbm [shape: f32[1,32], index: 1, kind: input, shape index: {}]   ;;  %s2104_s2 = inlined_call_operand.vmem [shape: f32[1,32], index: 2, kind: input, shape index: {}]   ;;  %s2105_s3 = inlined_call_operand.vmem [shape: bf16[32,32], index: 3, kind: input, shape index: {}]   ;;  %s2106_s4 = inlined_call_operand.vmem [shape: f32[1,32], index: 4, kind: input, shape index: {}]   ;;  %s2107_s5 = inlined_call_operand.vmem [shape: bf16[32,32], index: 5, kind: input, shape index: {}]   ;;  %s2108_s6 = inlined_call_operand.vmem [shape: f32[1,32], index: 6, kind: input, shape index: {}]   ;;  %s2109_s7 = inlined_call_operand.hbm [shape: bf16[32,32], index: 7, kind: input, shape index: {}]   ;;  %s2110_s8 = inlined_call_operand.vmem [shape: f32[1,32], index: 8, kind: input, shape index: {}]   ;;  %s2111_s9 = inlined_call_operand.hbm [shape: bf16[4,8,32], index: 9, kind: input, shape index: {}]   ;;  %s2112_s10 = inlined_call_operand.vmem [shape: f32[1,32], index: 10, kind: input, shape index: {}]   ;;  %s2113_s11 = inlined_call_operand.vmem [shape: f32[1,32], index: 11, kind: input, shape index: {}]   ;;  %s2114_s12 = inlined_call_operand.vmem [shape: f32[1,32], index: 12, kind: input, shape index: {}]   ;;  %s2115_s13 = inlined_call_operand.hbm [shape: bf16[32,64], index: 13, kind: input, shape index: {}]   ;;  %s2116_s14 = inlined_call_operand.vmem [shape: f32[1,64], index: 14, kind: input, shape index: {}]   ;;  %s2117_s15 = inlined_call_operand.vmem [shape: bf16[64,32], index: 15, kind: input, shape index: {}]   ;;  %s2118_s16 = inlined_call_operand.vmem [shape: f32[1,32], index: 16, kind: input, shape index: {}]   ;;  %s2119_s17 = inlined_call_operand.hbm [shape: f32[2,8,32], index: 17, kind: output, shape index: {}]  }
   0x1   :  { %2129 = sst [smem:[#allocation22_spill]] %s2102_s0 }
   0x2   :  { %2130 = sst [smem:[#allocation23_spill]] %s2103_s1 }
   0x3   :  { %2131 = sst [smem:[#allocation24_spill]] %s2109_s7 }
   0x4   :  { %2132 = sst [smem:[#allocation25_spill]] %s2116_s14 }
   0x5   :  { %2133 = sst [smem:[#allocation26_spill]] %s2118_s16 }
   0x6   :  { %2134 = sst [smem:[#allocation27_spill]] %s2119_s17 }
   0x7   :  { %22 = vsyncpa [#allocation3], 0 }
   0x8   :  { %23 = vsyncpa [#allocation6], 0 }
   0x9   :  { %24 = vsyncpa [#allocation9], 0 }
   0xa   :  { %25 = vsyncpa [#allocation4], 0 }
   0xb   :  { %27 = vsyncpa [#allocation4 + $0x1], 0  ;;  %s1847_s24 = smov 0   ;;  %s1849_s25 = smov 0  }
   0xc   :  { %s1851_s26 = smov 0   ;;  %s1853_s27 = smov 0  }
   0xd LB: > { %2135 = sst [smem:[#allocation15_spill]] %s1733_s24  ;;  %s1868_s28 = sadd.s32 4294967295, %s1745_s27   ;;  %s1745_s27 = sphi %s1853_s27, %s2156_s27   ;;  %s1741_s26 = sphi %s1851_s26, %s2158_s26   ;;  %s1737_s25 = sphi %s1849_s25, %s2160_s25   ;;  %s1733_s24 = sphi %s1847_s24, %s2159_s24  }
   0xe   : > { %2136 = sst [smem:[#allocation16_spill]] %s1741_s26  ;;  %s1338_s29 = sadd.s32 4294967294, %s1745_s27  }
   0xf   : > { %2137 = sst [smem:[#allocation17_spill]] %s1745_s27  ;;  %s1872_s0 = sadd.s32 1, %s1745_s27  }
  0x10   : > { %2138 = sst [smem:[#allocation18_spill]] %s1872_s0  ;;  %s402_s30 = sadd.s32 1, %s1741_s26 }
  0x11   : > { %s399_s18 = ssub.s32 %s1745_s27, %s1872_s0  ;;  %p412_p0 = scmp.ne.s32.totalorder %s1741_s26, %s1737_s25 }
  0x12   : > { %p400_p1 = scmp.eq.s32.totalorder %s399_s18, 0  ;;  %p413_p2 = scmp.eq.s32.totalorder %s1868_s28, 1 }
  0x13   : > { %p418_p3 = scmp.ne.s32.totalorder %s1737_s25, %s1733_s24  ;;  %p419_p4 = scmp.eq.s32.totalorder %s1338_s29, 1 }
  0x14   : > { %s1883_s19 = scalar_select %p400_p1, %s1741_s26, %s402_s30  }
  0x15   : > { %p1885_p5 = por %p413_p2, %p412_p0  ;;  %p1889_p6 = por %p419_p4, %p418_p3 }
  0x16   : > { %2139 = sst [smem:[#allocation19_spill]] %s1883_s19  ;;  %p1339_p7 = scmp.ge.s32.totalorder %s1745_s27, 1 }
  0x17   : > { %s2140_s1 = scalar_select %p1885_p5, 1, 0 }
  0x18   : > { %s2142_s20 = scalar_select %p1889_p6, 1, 0 }
  0x19   : > { %2141 = sst [smem:[#allocation20_spill]] %s2140_s1  ;;  %p426_p8 = scmp.lt.s32.totalorder %s1745_s27, 3 }
  0x1a   : > { %2143 = sst [smem:[#allocation21_spill]] %s2142_s20  ;;  %p1468_p9 = scmp.eq.s32.totalorder %s1868_s28, 0 }
  0x1b   : > { %p1896_p10 = pnand %p1339_p7, %p426_p8  ;;  %s2145_s7 = sld [smem:[#allocation24_spill]] }
  0x1c   : > { %s1747_s30 = smov [#allocation5]   ;;  %s2147_s20 = sld [smem:[#allocation23_spill]] }
  0x1d   : > { %p1451_p11 = pneg %p1896_p10  ;;  %s466_s18 = sshll.u32 %s1747_s30, 4  ;;  %s467_s18 = int_to_ptr.vmem [resolvable:$true] %s466_s18 }
  0x1e   : > { %s1748_s22 = smov 64   ;;  %s1749_s23 = smov 4  }
  0x1f   : > { %p1907_p12 = pnand %p1468_p9, %p1451_p11  ;;  %s1750_s30 = smov [#allocation2]  }
  0x20   : > { %s481_s17 = sshll.u32 %s2111_s9, 4  ;;  %s1751_s16 = smov [#allocation7]   ;;  %s482_s17 = int_to_ptr.hbm [resolvable:$true] %s481_s17 }
  0x21   : > { %s464_s29 = sshll.u32 %s2145_s7, 4  ;;  %s440_s7 = sshll.u32 %s1750_s30, 4  ;;  %s465_s29 = int_to_ptr.hbm [resolvable:$true] %s464_s29  ;;  %s441_s7 = int_to_ptr.vmem [resolvable:$true] %s440_s7 }
  0x22   : > { %s438_s24 = sshll.u32 %s2147_s20, 4  ;;  %s504_s20 = sshll.u32 %s2115_s13, 4  ;;  %s439_s24 = int_to_ptr.hbm [resolvable:$true] %s438_s24  ;;  %s505_s20 = int_to_ptr.hbm [resolvable:$true] %s504_s20 }
  0x23   : > { %1457 = dma.hbm_to_vmem [thread:$0]  (!%p1907_p12), %s465_s29, 256, %s467_s18, [#allocation6], %s1748_s22, %s1748_s22, %s1749_s23  }
  0x24   : > { %1454 = dma.hbm_to_vmem [thread:$0]  (!%p1907_p12), %s439_s24, 16, %s441_s7, [#allocation3]  }
  0x25   : > { %s483_s14 = sshll.u32 %s1751_s16, 4  ;;  %s1752_s29 = smov [#allocation8]   ;;  %s484_s14 = int_to_ptr.vmem [resolvable:$true] %s483_s14 }
  0x26   : > { %1460 = dma.hbm_to_vmem [thread:$0]  (!%p1907_p12), %s482_s17, 256, %s484_s14, [#allocation6], %s1748_s22, %s1748_s22, %s1749_s23  }
  0x27   : > { %s506_s18 = sshll.u32 %s1752_s29, 4  ;;  %538 = sbr.rel (%p1896_p10) target bundleno = 1794 (0x702), region = 88  ;;  %s507_s18 = int_to_ptr.vmem [resolvable:$true] %s506_s18 }
  0x28   : > { %1463 = dma.hbm_to_vmem [thread:$0]  (!%p1907_p12), %s505_s20, 256, %s507_s18, [#allocation9], %s1748_s22, %s1748_s22, %s1749_s23  }
  0x2c   : > { %1716 = dma.done.wait (%p1468_p9), [#allocation3], 16  }
  0x2d   : > { %1718 = vsyncadd (%p1468_p9), [#allocation3], 4294967280 }
  0x2e   : > { %1720 = dma.done.wait (%p1468_p9), [#allocation6], 512  }
  0x2f   : > { %1722 = vsyncadd (%p1468_p9), [#allocation6], 4294966784 }
  0x30   : > { %1724 = dma.done.wait (%p1468_p9), [#allocation9], 256  }
  0x31   : > { %1726 = vsyncadd (%p1468_p9), [#allocation9], 4294967040  ;;  %p605_p13 = scmp.lt.s32.totalorder %s1868_s28, 1  ;;  %s2148_s24 = sld [smem:[#allocation22_spill]]  ;;  %vm613_vm0 = vcmask 261120   ;;  %v1753_v2 = vmov 32.0  }
  0x32   : > { %1529 = vrcp.f32 %v1753_v2  ;;  %v1422_v14 = vld [vmem:[%s2105_s3 + $0x8] sm:$0xff]  ;;  %v1421_v17 = vld [vmem:[%s2105_s3] sm:$0xff]  ;;  %vm797_vm5 = vcmask 64512   ;;  %s1754_s17 = smov 120   ;;  %vm925_vm6 = vcmask 1043456   ;;  %s1756_s1 = smov 112  }
  0x33   : > { %s606_s7 = scalar_select %p605_p13, %s1868_s28, 1  ;;  %v1424_v15 = vld [vmem:[%s2107_s5 + $0x8] sm:$0xff]  ;;  %681 = vmatpush.bf16.msra.mxu0 %v1422_v14  ;;  %v1423_v18 = vld [vmem:[%s2107_s5] sm:$0xff]  ;;  %vm1203_vm10 = vcmask 523264  }
  0x34   : > { %v1426_v16 = vld [vmem:[#allocation5 + $0x8] sm:$0xff]  ;;  %715 = vmatpush.bf16.msra.mxu1 %v1424_v15  ;;  %v1425_v19 = vld [vmem:[#allocation5] sm:$0xff]  ;;  %v1519_v29 = vld [vmem:[#allocation2] ss:$0 sm:$0xff]  ;;  %s602_s21 = sand.u32 1, %s1737_s25   ;;  %s1418_s23 = sshll.u32 %s1868_s28, 3 }
  0x35   : > { %s1351_s14 = sshll.u32 %s606_s7, 3  ;;  %748 = vmatpush.bf16.msra.mxu2 %v1426_v16  ;;  %v1520_v32 = vld [vmem:[%s2104_s2] ss:$0 sm:$0xff]  ;;  %s1350_s22 = sshll.u32 %s602_s21, 3 }
  0x36   : > { %v1521_v36 = vld [vmem:[%s2106_s4] ss:$0 sm:$0xff]  ;;  %s2150_s0 = sld [smem:[#allocation26_spill]]  ;;  %s604_s16 = scalar_lea.vmem [#allocation10], %s1350_s22 }
  0x37   : > { %s608_s27 = scalar_lea.vmem %s2148_s24, %s1351_s14  ;;  %682 = vmatpush.bf16.msra.mxu0 %v1421_v17  ;;  %v1522_v37 = vld [vmem:[%s2108_s6] ss:$0 sm:$0xff]  ;;  %s1755_s24 = smov 104  }
  0x38   : > { %v610_v0 = vld [vmem:[%s608_s27] sm:$0xff]  ;;  %v1530_v3 = vpop.eup %1529  ;;  %716 = vmatpush.bf16.msra.mxu1 %v1423_v18  ;;  %s2151_s18 = sld [smem:[#allocation27_spill]]  ;;  %s1223_s28 = scalar_lea.sflag [#allocation4], %s602_s21 }
  0x39   : > { %v614_v1 = vsel %vm613_vm0, %v610_v0, 0.0  ;;  %v618_v4 = vmul.f32 32.0, %v1530_v3  ;;  %vm622_vm1 = vweird.f32 %v1530_v3  ;;  %749 = vmatpush.bf16.msra.mxu2 %v1425_v19  ;;  %v1523_v44 = vld [vmem:[%s2110_s8] ss:$0 sm:$0xff] }
  0x3a   : > { %615 = vadd.xlane.f32.xlu0 %v614_v1 }
  0x3b   : > { %v619_v5 = vsub.f32 1.0, %v618_v4 }
  0x3d   : > { %v620_v6 = vmul.f32 %v1530_v3, %v619_v5 }
  0x3e   : > { %s1233_s14 = scalar_lea.hbm %s2151_s18, %s1418_s23  ;;  %s1691_s22 = scalar_lea.hbm %s2151_s18, 16 }
  0x3f   : > { %v621_v7 = vadd.f32 %v1530_v3, %v620_v6 }
  0x41   : > { %v1948_v8 = vsel %vm622_vm1, %v1530_v3, %v621_v7 }
  0xad   : > { %v616_v9 = vpop.xlane.xlu0 %615 }
  0xae   : > { %v624_v10 = vmul.f32 %v1948_v8, %v616_v9 }
  0xb0   : > { %v625_v11 = vsub.f32 %v610_v0, %v624_v10 }
  0xb2   : > { %v626_v12 = vmul.f32 %v625_v11, %v625_v11 }
  0xb4   : > { %v627_v13 = vsel %vm613_vm0, %v626_v12, 0.0 }
  0xb5   : > { %628 = vadd.xlane.f32.xlu0 %v627_v13 }
 0x128   : > { %v629_v20 = vpop.xlane.xlu0 %628 }
 0x129   : > { %v630_v21 = vmul.f32 %v629_v20, %v1948_v8 }
 0x12b   : > { %v631_v22 = vadd.f32 1e-05, %v630_v21 }
 0x12d   : > { %1531 = vrsqrt.f32 %v631_v22  ;;  %vm638_vm3 = vweird.f32 %v631_v22 }
 0x133   : > { %v1532_v23 = vpop.eup %1531 }
 0x134   : > { %v633_v24 = vmul.f32 %v1532_v23, %v631_v22  ;;  %vm639_vm2 = vweird.f32 %v1532_v23 }
 0x135   : > { %vm640_vm4 = vmor %vm638_vm3, %vm639_vm2 }
 0x136   : > { %v634_v25 = vmul.f32 %v1532_v23, %v633_v24 }
 0x138   : > { %v635_v26 = vmul.f32 0.5, %v634_v25 }
 0x13a   : > { %v636_v27 = vsub.f32 1.5, %v635_v26 }
 0x13c   : > { %v637_v28 = vmul.f32 %v1532_v23, %v636_v27 }
 0x13e   : > { %v641_v30 = vsel %vm640_vm4, %v1532_v23, %v637_v28 }
 0x13f   : > { %v642_v31 = vmul.f32 %v641_v30, %v625_v11 }
 0x141   : > { %v646_v33 = vmul.f32 %v1519_v29, %v642_v31 }
 0x143   : > { %v1968_v34 = vadd.f32 %v1520_v32, %v646_v33 }
 0x145   : > { %v651_v35 = vpack.c.bf16 %v1968_v34, %v1968_v34 }
 0x147   : > { %1360 = vmatmul.msk.bf16.vlgmr.msra.gmra.mxu0 %vm613_vm0, %v651_v35  ;;  %1369 = vmatmul.msk.bf16.vlgmr.msra.gmra.mxu1 %vm613_vm0, %v651_v35 }
 0x148   : > { %1378 = vmatmul.msk.bf16.vlgmr.msra.gmra.mxu2 %vm613_vm0, %v651_v35 }
 0x1c4   : > { %v684_v38 = vpop.f32.mrf.mxu0  ;;  %v718_v39 = vpop.f32.mrf.mxu1 }
 0x1c5   : > { %v685_v40 = vadd.f32 %v1521_v36, %v684_v38  ;;  %v719_v41 = vadd.f32 %v1522_v37, %v718_v39 }
 0x1c7   : > { %v688_v42 = vmul.f32 0.35355338, %v685_v40  ;;  %770 = vrot.lane.b32.xlu2 %v719_v41, %s1754_s17  ;;  %776 = vrot.lane.b32.xlu1 %v719_v41, %s1755_s24  ;;  %v779_v43 = vpack.c.bf16 %v719_v41, %v719_v41 }
 0x1c9   : > { %756 = vrot.lane.b32.xlu0 %v688_v42, %s1754_s17  ;;  %v802_v45 = vsel %vm797_vm5, %v779_v43, 0  ;;  %v765_v52 = vpack.c.bf16 %v688_v42, %v688_v42 }
 0x1ca   : > { %811 = vmatpush.bf16.xpose.msra.mxu3 %v802_v45 }
 0x1cb   : > { %v751_v46 = vpop.f32.mrf.mxu2 }
 0x1cc   : > { %v1988_v47 = vadd.f32 %v1523_v44, %v751_v46  ;;  %v686_v48 = vpop.f32.mrf.mxu0  ;;  %v720_v49 = vpop.f32.mrf.mxu1 }
 0x1cd   : > { %v1003_v48 = vld [vmem:[#allocation7] sm:$0xf] }
 0x1ce   : > { %v793_v50 = vpack.c.bf16 %v1988_v47, %v1988_v47  ;;  %v1011_v49 = vsel %vm925_vm6, %v1003_v48, 0  ;;  %v1427_v48 = vld [vmem:[#allocation8] sm:$0xff] }
 0x1cf   : > { %773 = vrot.lane.b32.xlu2 %v719_v41, %s1756_s1  ;;  %762 = vrot.lane.b32.xlu1 %v688_v42, %s1755_s24 }
 0x1d0   : > { %v927_v51 = vsel %vm925_vm6, %v793_v50, 0 }
 0x1d1   : > { %1379 = vmatmul.msk.bf16.vlgmr.msra.gmra.mxu3 %vm797_vm5, %v765_v52 }
 0x1d2   : > { %936 = vmatpush.bf16.msrb.mxu3 %v927_v51 }
 0x1d3   : > { %v753_v53 = vpop.f32.mrf.mxu2 }
 0x1d6   : > { %1020 = vmatpush.bf16.msra.mxu3 %v1011_v49  ;;  %v1432_v49 = vld [vmem:[%s2117_s15 + $0x18] sm:$0xff] }
 0x1d7   : > { %759 = vrot.lane.b32.xlu1 %v688_v42, %s1756_s1 }
 0x221   : > { %v771_v54 = vpop.permute.xlu2 %770 }
 0x222   : > { %v780_v55 = vpack.c.bf16 %v771_v54, %v771_v54 }
 0x224   : > { %v821_v56 = vsel %vm797_vm5, %v780_v55, 0 }
 0x225   : > { %830 = vmatpush.bf16.xpose.msrb.mxu0 %v821_v56 }
 0x229   : > { %v774_v57 = vpop.permute.xlu2 %773 }
 0x22a   : > { %v781_v58 = vpack.c.bf16 %v774_v57, %v774_v57 }
 0x22c   : > { %v840_v59 = vsel %vm797_vm5, %v781_v58, 0 }
 0x22d   : > { %849 = vmatpush.bf16.xpose.msrb.mxu1 %v840_v59 }
 0x239   : > { %v777_v60 = vpop.permute.xlu1 %776 }
 0x23a   : > { %v782_v61 = vpack.c.bf16 %v777_v60, %v777_v60 }
 0x23b   : > { %v757_v62 = vpop.permute.xlu0 %756 }
 0x23c   : > { %v766_v63 = vpack.c.bf16 %v757_v62, %v757_v62  ;;  %v859_v0 = vsel %vm797_vm5, %v782_v61, 0 }
 0x23d   : > { %868 = vmatpush.bf16.xpose.msrb.mxu2 %v859_v0 }
 0x23e   : > { %1380 = vmatmul.msk.bf16.vlgmr.msrb.gmra.mxu0 %vm797_vm5, %v766_v63 }
 0x241   : > { %v763_v1 = vpop.permute.xlu1 %762 }
 0x242   : > { %v768_v2 = vpack.c.bf16 %v763_v1, %v763_v1 }
 0x244   : > { %1382 = vmatmul.msk.bf16.vlgmr.msrb.gmra.mxu2 %vm797_vm5, %v768_v2 }
 0x249   : > { %v760_v3 = vpop.permute.xlu1 %759 }
 0x24a   : > { %v767_v4 = vpack.c.bf16 %v760_v3, %v760_v3 }
 0x24c   : > { %1381 = vmatmul.msk.bf16.vlgmr.msrb.gmra.mxu1 %vm797_vm5, %v767_v4 }
 0x254   : > { %v813_v5 = vpop.f32.mrf.mxu3 }
 0x255   : > { %v874_v6 = vsel %vm797_vm5, %v813_v5, -inf }
 0x256   : > { %875 = vmax.xlane.f32.xlu2 %v874_v6 }
 0x25c   : > { %v815_v7 = vpop.f32.mrf.mxu3 }
 0x25d   : > { %v1005_v7 = vld [vmem:[#allocation7 + $0x8] sm:$0xf] }
 0x2bb   : > { %v832_v9 = vpop.f32.mrf.mxu0 }
 0x2bc   : > { %v877_v10 = vsel %vm797_vm5, %v832_v9, -inf }
 0x2bd   : > { %878 = vmax.xlane.f32.xlu0 %v877_v10  ;;  %v1004_v10 = vld [vmem:[#allocation7 + $0x4] sm:$0xf] }
 0x2c3   : > { %v834_v11 = vpop.f32.mrf.mxu0 }
 0x2c4   : > { %v1030_v11 = vsel %vm925_vm6, %v1004_v10, 0 }
 0x2c7   : > { %v870_v12 = vpop.f32.mrf.mxu2 }
 0x2c8   : > { %v883_v13 = vsel %vm797_vm5, %v870_v12, -inf }
 0x2c9   : > { %884 = vmax.xlane.f32.xlu1 %v883_v13  ;;  %v851_v14 = vpop.f32.mrf.mxu1  ;;  %v876_v15 = vpop.xlane.xlu2 %875 }
 0x2ca   : > { %v880_v16 = vsel %vm797_vm5, %v851_v14, -inf  ;;  %v886_v17 = vsub.f32 %v813_v5, %v876_v15  ;;  %v1006_v5 = vld [vmem:[#allocation7 + $0xc] sm:$0xf] }
 0x2cb   : > { %881 = vmax.xlane.f32.xlu2 %v880_v16  ;;  %v1068_v6 = vsel %vm925_vm6, %v1006_v5, 0 }
 0x2cc   : > { %v890_v18 = vmul.f32 1.442695, %v886_v17 }
 0x2ce   : > { %1533 = vpow2.f32 %v890_v18 }
 0x2cf   : > { %v872_v19 = vpop.f32.mrf.mxu2 }
 0x2d1   : > { %v853_v20 = vpop.f32.mrf.mxu1 }
 0x2d4   : > { %v1534_v21 = vpop.eup %1533 }
 0x2d5   : > { %v898_v22 = vsel %vm797_vm5, %v1534_v21, 0.0 }
 0x2d6   : > { %899 = vadd.xlane.f32.xlu2 %v898_v22 }
 0x2ee   : > { %790 = vrot.lane.b32.xlu2 %v1988_v47, %s1755_s24  ;;  %s1237_s24 = sshll.u32 %s1233_s14, 4  ;;  %s1238_s24 = int_to_ptr.hbm [resolvable:$true] %s1237_s24 }
 0x2ef   : > { %s1685_s27 = sshra.s32 %s1238_s24, 4  ;;  %s1686_s27 = int_to_ptr.hbm [resolvable:$true] %s1685_s27 }
 0x2f0   : > { %s1687_s19 = scalar_lea.hbm %s1686_s27, 8  ;;  %p1692_p3 = scmp.lt.s32.totalorder %s1686_s27, %s2151_s18 }
 0x2f1   : > { %p1688_p0 = scmp.ne.s32.totalorder %s1686_s27, %s1687_s19  ;;  %p1693_p4 = scmp.lt.s32.totalorder %s1691_s22, %s1687_s19 }
 0x2f3   : > { %p1689_p1 = pnand %p1688_p0, %p1885_p5  ;;  %p1694_p7 = por %p1693_p4, %p1692_p3 }
 0x2f5   : > { %p1690_p2 = pneg %p1689_p1 }
 0x2f7   : > { %p1695_p8 = pnand %p1694_p7, %p1690_p2 }
 0x330   : > { %v879_v23 = vpop.xlane.xlu0 %878 }
 0x331   : > { %v887_v24 = vsub.f32 %v832_v9, %v879_v23  ;;  %v1049_v9 = vsel %vm925_vm6, %v1005_v7, 0 }
 0x333   : > { %v892_v25 = vmul.f32 1.442695, %v887_v24 }
 0x335   : > { %1535 = vpow2.f32 %v892_v25 }
 0x33b   : > { %v1536_v26 = vpop.eup %1535 }
 0x33c   : > { %v885_v27 = vpop.xlane.xlu1 %884  ;;  %v901_v28 = vsel %vm797_vm5, %v1536_v26, 0.0 }
 0x33d   : > { %v889_v29 = vsub.f32 %v870_v12, %v885_v27  ;;  %902 = vadd.xlane.f32.xlu1 %v901_v28 }
 0x33e   : > { %v882_v30 = vpop.xlane.xlu2 %881 }
 0x33f   : > { %v896_v31 = vmul.f32 1.442695, %v889_v29  ;;  %v888_v32 = vsub.f32 %v851_v14, %v882_v30 }
 0x341   : > { %1537 = vpow2.f32 %v896_v31  ;;  %v894_v33 = vmul.f32 1.442695, %v888_v32  ;;  %v1524_v32 = vld [vmem:[%s2112_s10] ss:$0 sm:$0xff] }
 0x343   : > { %1539 = vpow2.f32 %v894_v33 }
 0x347   : > { %v1538_v35 = vpop.eup %1537 }
 0x348   : > { %v907_v36 = vsel %vm797_vm5, %v1538_v35, 0.0 }
 0x349   : > { %v1540_v37 = vpop.eup %1539  ;;  %908 = vadd.xlane.f32.xlu1 %v907_v36  ;;  %v900_v38 = vpop.xlane.xlu2 %899 }
 0x34a   : > { %v904_v39 = vsel %vm797_vm5, %v1540_v37, 0.0  ;;  %1541 = vrcp.f32 %v900_v38 }
 0x34b   : > { %905 = vadd.xlane.f32.xlu0 %v904_v39 }
 0x350   : > { %v1542_v40 = vpop.eup %1541 }
 0x351   : > { %v914_v41 = vmul.f32 %v1542_v40, %v1534_v21  ;;  %v791_v42 = vpop.permute.xlu2 %790 }
 0x352   : > { %v796_v43 = vpack.c.bf16 %v791_v42, %v791_v42 }
 0x353   : > { %v918_v44 = vpack.c.bf16 %v914_v41, %v914_v41 }
 0x354   : > { %v984_v45 = vsel %vm925_vm6, %v796_v43, 0 }
 0x355   : > { %1383 = vmatmul.msk.bf16.vlgmr.msrb.gmra.mxu3 %vm797_vm5, %v918_v44  ;;  %993 = vmatpush.bf16.msra.mxu2 %v984_v45 }
 0x359   : > { %1077 = vmatpush.bf16.msrb.mxu2 %v1068_v6 }
 0x35f   : > { %787 = vrot.lane.b32.xlu0 %v1988_v47, %s1756_s1  ;;  %s2149_s1 = sld [smem:[#allocation25_spill]] }
 0x362   : > { %784 = vrot.lane.b32.xlu1 %v1988_v47, %s1754_s17  ;;  %s1235_s17 = sshll.u32 %s604_s16, 4  ;;  %s1236_s17 = int_to_ptr.vmem [resolvable:$true] %s1235_s17 }
 0x3b0   : > { %v903_v46 = vpop.xlane.xlu1 %902 }
 0x3bc   : > { %v909_v50 = vpop.xlane.xlu1 %908 }
 0x3bd   : > { %1543 = vrcp.f32 %v909_v50 }
 0x3be   : > { %v906_v54 = vpop.xlane.xlu0 %905 }
 0x3bf   : > { %1545 = vrcp.f32 %v906_v54 }
 0x3c0   : > { %1547 = vrcp.f32 %v903_v46  ;;  %v1428_v46 = vld [vmem:[#allocation8 + $0x8] sm:$0xff] }
 0x3c1   : > { %1158 = vmatpush.bf16.msrb.mxu3 %v1428_v46 }
 0x3c3   : > { %v1544_v51 = vpop.eup %1543 }
 0x3c4   : > { %v917_v52 = vmul.f32 %v1544_v51, %v1538_v35  ;;  %v1431_v51 = vld [vmem:[%s2117_s15 + $0x10] sm:$0xff] }
 0x3c5   : > { %v1546_v55 = vpop.eup %1545  ;;  %1159 = vmatpush.bf16.msrb.mxu3 %v1427_v48 }
 0x3c6   : > { %v921_v53 = vpack.c.bf16 %v917_v52, %v917_v52  ;;  %v1548_v57 = vpop.eup %1547  ;;  %v916_v58 = vmul.f32 %v1546_v55, %v1540_v37 }
 0x3c7   : > { %v915_v61 = vmul.f32 %v1548_v57, %v1536_v26 }
 0x3c8   : > { %1386 = vmatmul.msk.bf16.vlgmr.msra.gmra.mxu2 %vm797_vm5, %v921_v53  ;;  %v920_v63 = vpack.c.bf16 %v916_v58, %v916_v58 }
 0x3c9   : > { %v919_v1 = vpack.c.bf16 %v915_v61, %v915_v61 }
 0x3d1   : > { %v788_v56 = vpop.permute.xlu0 %787 }
 0x3d2   : > { %v795_v47 = vpack.c.bf16 %v788_v56, %v788_v56 }
 0x3d4   : > { %v965_v59 = vsel %vm925_vm6, %v795_v47, 0  ;;  %v785_v60 = vpop.permute.xlu1 %784 }
 0x3d5   : > { %v794_v62 = vpack.c.bf16 %v785_v60, %v785_v60  ;;  %974 = vmatpush.bf16.msra.mxu1 %v965_v59  ;;  %v1526_v59 = vld [vmem:[%s2114_s12] ss:$0 sm:$0xff] }
 0x3d7   : > { %v946_v0 = vsel %vm925_vm6, %v794_v62, 0 }
 0x3d8   : > { %955 = vmatpush.bf16.msra.mxu0 %v946_v0  ;;  %1385 = vmatmul.msk.bf16.vlgmr.msra.gmra.mxu1 %vm797_vm5, %v920_v63  ;;  %v938_v2 = vpop.f32.mrf.mxu3  ;;  %v1430_v0 = vld [vmem:[%s2117_s15 + $0x8] sm:$0xff] }
 0x3d9   : > { %v999_v3 = vpack.c.bf16 %v938_v2, %v938_v2  ;;  %1058 = vmatpush.bf16.msrb.mxu1 %v1049_v9  ;;  %v1527_v2 = vld [vmem:[%s2149_s1] ss:$0 sm:$0xff] }
 0x3da   : > { %v1528_v9 = vld [vmem:[%s2150_s0] ss:$0 sm:$0xff] }
 0x3db   : > { %1384 = vmatmul.msk.bf16.vlgmr.msra.gmra.mxu0 %vm797_vm5, %v919_v1  ;;  %1387 = vmatmul.msk.bf16.vlgmr.msra.gmra.mxu3 %vm797_vm5, %v999_v3  ;;  %v1429_v1 = vld [vmem:[%s2117_s15] sm:$0xff] }
 0x3dc   : > { %1039 = vmatpush.bf16.msrb.mxu0 %v1030_v11 }
 0x3e0   : > { %v940_v4 = vpop.f32.mrf.mxu3  ;;  %1211 = vmatpush.bf16.msra.mxu0 %v1432_v49 }
 0x3e4   : > { %1212 = vmatpush.bf16.msra.mxu0 %v1431_v51 }
 0x3e8   : > { %1213 = vmatpush.bf16.msra.mxu0 %v1430_v0 }
 0x3ec   : > { %1214 = vmatpush.bf16.msra.mxu0 %v1429_v1 }
 0x44b   : > { %v995_v12 = vpop.f32.mrf.mxu2 }
 0x44c   : > { %v1002_v13 = vpack.c.bf16 %v995_v12, %v995_v12 }
 0x44e   : > { %1390 = vmatmul.msk.bf16.vlgmr.msrb.gmra.mxu2 %vm797_vm5, %v1002_v13 }
 0x453   : > { %v997_v14 = vpop.f32.mrf.mxu2 }
 0x455   : > { %v976_v15 = vpop.f32.mrf.mxu1 }
 0x456   : > { %v1001_v16 = vpack.c.bf16 %v976_v15, %v976_v15 }
 0x458   : > { %v957_v17 = vpop.f32.mrf.mxu0  ;;  %1389 = vmatmul.msk.bf16.vlgmr.msrb.gmra.mxu1 %vm797_vm5, %v1001_v16 }
 0x459   : > { %v1000_v18 = vpack.c.bf16 %v957_v17, %v957_v17 }
 0x45b   : > { %1388 = vmatmul.msk.bf16.vlgmr.msrb.gmra.mxu0 %vm797_vm5, %v1000_v18 }
 0x45d   : > { %v978_v19 = vpop.f32.mrf.mxu1 }
 0x45e   : > { %v1022_v20 = vpop.f32.mrf.mxu3 }
 0x45f   : > { %v1083_v26 = vsel %vm613_vm0, %v1022_v20, 0.0 }
 0x460   : > { %v959_v21 = vpop.f32.mrf.mxu0 }
 0x466   : > { %v1024_v22 = vpop.f32.mrf.mxu3 }
 0x4d1   : > { %v1079_v23 = vpop.f32.mrf.mxu2 }
 0x4d2   : > { %v1088_v33 = vsel %vm613_vm0, %v1079_v23, 0.0 }
 0x4d5   : > { %v1060_v24 = vpop.f32.mrf.mxu1 }
 0x4d6   : > { %v1086_v30 = vsel %vm613_vm0, %v1060_v24, 0.0 }
 0x4d8   : > { %v1041_v25 = vpop.f32.mrf.mxu0 }
 0x4d9   : > { %v1084_v27 = vsel %vm613_vm0, %v1041_v25, 0.0  ;;  %v1081_v28 = vpop.f32.mrf.mxu2 }
 0x4da   : > { %v1085_v29 = vadd.f32 %v1084_v27, %v1083_v26 }
 0x4dc   : > { %v1087_v31 = vadd.f32 %v1086_v30, %v1085_v29 }
 0x4dd   : > { %v1062_v35 = vpop.f32.mrf.mxu1 }
 0x4de   : > { %v1089_v36 = vadd.f32 %v1088_v33, %v1087_v31 }
 0x4e0   : > { %v1043_v37 = vpop.f32.mrf.mxu0  ;;  %v1094_v38 = vadd.f32 %v1524_v32, %v1089_v36 }
 0x4e2   : > { %v1095_v39 = vadd.f32 %v1094_v38, %v1968_v34 }
 0x4e4   : > { %v1098_v40 = vsel %vm613_vm0, %v1095_v39, 0.0 }
 0x4e5   : > { %1099 = vadd.xlane.f32.xlu2 %v1098_v40 }
 0x558   : > { %v1100_v41 = vpop.xlane.xlu2 %1099 }
 0x559   : > { %v1101_v42 = vmul.f32 %v1100_v41, %v1948_v8 }
 0x55b   : > { %v1102_v43 = vsub.f32 %v1095_v39, %v1101_v42 }
 0x55d   : > { %v1103_v44 = vmul.f32 %v1102_v43, %v1102_v43 }
 0x55f   : > { %v1104_v45 = vsel %vm613_vm0, %v1103_v44, 0.0 }
 0x560   : > { %1105 = vadd.xlane.f32.xlu0 %v1104_v45 }
 0x5d3   : > { %v1106_v34 = vpop.xlane.xlu0 %1105 }
 0x5d4   : > { %v1107_v50 = vmul.f32 %v1106_v34, %v1948_v8  ;;  %v1525_v8 = vld [vmem:[%s2113_s11] ss:$0 sm:$0xff] }
 0x5d6   : > { %v1108_v52 = vadd.f32 1e-05, %v1107_v50 }
 0x5d8   : > { %1549 = vrsqrt.f32 %v1108_v52  ;;  %vm1115_vm8 = vweird.f32 %v1108_v52 }
 0x5de   : > { %v1550_v53 = vpop.eup %1549 }
 0x5df   : > { %v1110_v54 = vmul.f32 %v1550_v53, %v1108_v52  ;;  %vm1116_vm7 = vweird.f32 %v1550_v53 }
 0x5e0   : > { %vm1117_vm9 = vmor %vm1115_vm8, %vm1116_vm7 }
 0x5e1   : > { %v1111_v55 = vmul.f32 %v1550_v53, %v1110_v54 }
 0x5e3   : > { %v1112_v56 = vmul.f32 0.5, %v1111_v55 }
 0x5e5   : > { %v1113_v57 = vsub.f32 1.5, %v1112_v56 }
 0x5e7   : > { %v1114_v58 = vmul.f32 %v1550_v53, %v1113_v57 }
 0x5e9   : > { %v1118_v47 = vsel %vm1117_vm9, %v1550_v53, %v1114_v58 }
 0x5ea   : > { %v1119_v60 = vmul.f32 %v1118_v47, %v1102_v43 }
 0x5ec   : > { %v1123_v61 = vmul.f32 %v1525_v8, %v1119_v60 }
 0x5ee   : > { %v1127_v62 = vadd.f32 %v1526_v59, %v1123_v61 }
 0x5f0   : > { %v1128_v63 = vpack.c.bf16 %v1127_v62, %v1127_v62 }
 0x5f2   : > { %1399 = vmatmul.msk.bf16.vlgmr.msrb.gmra.mxu3 %vm613_vm0, %v1128_v63 }
 0x675   : > { %v1161_v3 = vpop.f32.mrf.mxu3 }
 0x676   : > { %v1162_v4 = vadd.f32 %v1527_v2, %v1161_v3 }
 0x678   : > { %v1165_v5 = vmax.f32 %v1162_v4, 0.0 }
 0x67a   : > { %v1166_v6 = vpack.c.bf16 %v1165_v5, %v1165_v5 }
 0x67c   : > { %1416 = vmatmul.msk.bf16.vlgmr.msra.gmra.mxu0 %vm1203_vm10, %v1166_v6 }
 0x67d   : > { %v1163_v7 = vpop.f32.mrf.mxu3 }
 0x6f9   : > { %v1216_v10 = vpop.f32.mrf.mxu0 }
 0x6fa   : > { %v1217_v11 = vadd.f32 %v1528_v9, %v1216_v10 }
 0x6fc   : > { %v1220_v12 = vadd.f32 %v1217_v11, %v1127_v62 }
 0x6fe   : > { %1221 = vst.msk [vmem:[%s604_s16] sm:$0xff] %vm613_vm0, %v1220_v12 }
 0x6ff   : > { %1698 = shalt.err (!%p1695_p8)
}
 0x700   : > { %1449 = dma.vmem_to_hbm [thread:$0]  (%p1885_p5), %s1236_s17, 128, %s1238_s24, %s1223_s28  }
 0x701   : > { %v1218_v13 = vpop.f32.mrf.mxu0 }
 0x702 PF: > { %s2153_s21 = sld [smem:[#allocation17_spill]] }
 0x703   : > { %s2154_s0 = sld [smem:[#allocation15_spill]] }
 0x708   : > { %p1476_p9 = scmp.ge.s32.totalorder %s2153_s21, 2 }
 0x709   : > { %s1249_s29 = sand.u32 1, %s2154_s0  }
 0x70a   : > { %p1465_p10 = pnand %p1476_p9, %p1889_p6  ;;  %s1250_s14 = scalar_lea.sflag [#allocation4], %s1249_s29 }
 0x70c   : > { %p1466_p11 = pneg %p1465_p10 }
 0x70e   : > { %1728 = dma.done.wait (%p1466_p11), %s1250_s14, 128  }
 0x70f   : > { %1730 = vsyncadd (%p1466_p11), %s1250_s14, 4294967168  ;;  %s2156_s27 = sld [smem:[#allocation18_spill]]  ;;  %s2159_s24 = smov %s1737_s25 }
 0x710   : > { %s2157_s16 = sld [smem:[#allocation16_spill]] }
 0x711   : > { %s2158_s26 = sld [smem:[#allocation19_spill]] }
 0x715   : > { %p30_p12 = scmp.ge.s32.totalorder %s2156_s27, 4  }
 0x716   : > { %s2160_s25 = smov %s2157_s16 }
 0x717   :  { %32 = sbr.rel (!%p30_p12) target bundleno = 13 (0xd), region = 140 }
 0x71c   :  { %1256 = vsyncpa [#allocation3], 1 }
 0x71d   :  { %1258 = vsyncpa [#allocation3 + $0x1], 1 }
 0x71e   :  { %1259 = vsyncpa [#allocation6], 1 }
 0x71f   :  { %1260 = vsyncpa [#allocation9], 1 }
 0x720   :  { %1261 = vsyncpa [#allocation4], 1 }
 0x721   :  { %1263 = vsyncpa [#allocation4 + $0x1], 1 }

</bundles_post_ra>
